<compile_context>
chip_gen: v5e
topology: v5e:2x2
jax: 0.10.0
libtpu: 0.0.40
codegen_flags: <defaults>
</compile_context>

<pallas_src>
import functools

import jax
import jax.numpy as jnp
import numpy as np
from jax.experimental import pallas as pl
from jax.experimental.pallas import tpu as pltpu


def _round_up(x, m):
    return ((x + m - 1) // m) * m


def critic_kernel(state_ref, action_ref, w1s_ref, w1a_ref, b1_ref,
                  w2_ref, b2_ref, w3_ref, b3_ref, o_ref):
    s = state_ref[...]                                    # (tile, S) f32
    a = action_ref[...]                                   # (tile, A) f32

    # ---- Layer 1: fused "concat" via split weights ----
    # State term on the MXU with bf16 inputs / f32 accumulation.
    h1 = jnp.dot(s.astype(jnp.bfloat16), w1s_ref[...],
                 preferred_element_type=jnp.float32)      # (tile, Hp) f32
    act_dim = a.shape[-1]
    if act_dim <= 4:
        # Tiny action contribution: VPU broadcast multiply-adds (f32) instead
        # of a K=act_dim MXU outer-product pass.
        for j in range(act_dim):                          # static unroll
            h1 = h1 + a[:, j:j + 1] * w1a_ref[j:j + 1, :]
    else:
        h1 = h1 + jnp.dot(a.astype(jnp.bfloat16),
                          w1a_ref[...].astype(jnp.bfloat16),
                          preferred_element_type=jnp.float32)
    h1 = jnp.maximum(h1 + b1_ref[...], 0.0)

    # ---- Layer 2: Linear + ReLU (bf16 MXU inputs, f32 bias/ReLU) ----
    h2 = jnp.dot(h1.astype(jnp.bfloat16), w2_ref[...],
                 preferred_element_type=jnp.float32) + b2_ref[...]
    h2 = jnp.maximum(h2, 0.0)

    # ---- Layer 3 (Hp -> 1), emitted LANE-DENSE ----
    # (1, Hp) @ (Hp, tile) -> (1, tile): batch lands on the lane axis so the
    # store is an unmasked lane-dense vst (vs. a (tile, 1) masked store).
    q = jnp.dot(w3_ref[...], h2.T,
                preferred_element_type=jnp.float32) + b3_ref[0, 0]
    o_ref[...] = q.astype(o_ref.dtype)


@functools.partial(jax.jit, static_argnames=("tile_b",))
def critic_forward(state, action, kparams, tile_b=2048):
    """Pallas Critic forward.

    state:  (B, S) or (S,);  action: (B, A) or (A,).  Returns (B, 1) f32.
    kparams: kernel-layout params from prepare_kernel_params().
    """
    if action.ndim == 1:
        action = action[None, :]
    if state.ndim == 1:
        state = state[None, :]
    state = state.astype(jnp.float32)
    action = action.astype(jnp.float32)

    w1s, w1a, b1, w2, b2, w3, b3 = kparams
    B, S = state.shape
    A = action.shape[1]
    Hp = w2.shape[0]                      # lane-padded hidden (multiple of 128)

    # Batch tile: multiple of 128 (lane-dense output), >= 2 grid steps once B
    # is large enough (keeps both v7x TensorCores busy), capped so the f32
    # h1/h2 intermediates stay within a few MiB of VMEM (tightest on v7x).
    act_cap = max(128, ((8 << 20) // (8 * Hp)) // 128 * 128)
    tile = min(_round_up(max(tile_b, 128), 128),
               _round_up(pl.cdiv(B, 2), 128),
               act_cap)
    nt = pl.cdiv(B, tile)                 # ragged last tile: reads are clipped

    wbytes = w2.dtype.itemsize
    vmem_est = (4 * tile * (S + A) * 4                         # input tiles x2 buffers
                + 2 * (S * Hp * w1s.dtype.itemsize + A * Hp * 4 + 3 * Hp * 4)
                + 2 * Hp * Hp * wbytes                          # w2 x2 buffers
                + 2 * tile * Hp * 4                             # h1 / h2 live values
                + 4 * tile * 4)                                 # output row x2 buffers
    ckw = {"dimension_semantics": ("parallel",)}
    if vmem_est > (24 << 20):
        # TODO(synk): on v7x (64 MiB physical VMEM) prefer shrinking tile_b /
        # single-buffering the resident weight specs over raising this further.
        ckw["vmem_limit_bytes"] = int(min(vmem_est + (8 << 20), 64 << 20))

    def weight_spec(shape):
        # Full-array block, constant block index -> stays VMEM-resident across
        # the whole batch grid.
        return pl.BlockSpec(shape, lambda i: (0, 0))

    out = pl.pallas_call(
        critic_kernel,
        out_shape=jax.ShapeDtypeStruct((1, nt * tile), jnp.float32),
        grid=(nt,),
        in_specs=[
            pl.BlockSpec((tile, S), lambda i: (i, 0)),          # state tile
            pl.BlockSpec((tile, A), lambda i: (i, 0)),          # action tile
            weight_spec((S, Hp)),                               # w1_state (bf16)
            weight_spec((A, Hp)),                               # w1_action (f32)
            weight_spec((1, Hp)),                               # b1
            weight_spec((Hp, Hp)),                              # w2 (bf16)
            weight_spec((1, Hp)),                               # b2
            weight_spec((1, Hp)),                               # w3 row (f32)
            pl.BlockSpec(memory_space=pltpu.MemorySpace.SMEM),  # b3 scalar
        ],
        out_specs=pl.BlockSpec((1, tile), lambda i: (0, i)),
        compiler_params=pltpu.CompilerParams(**ckw),
    )(state, action, w1s, w1a, b1, w2, b2, w3, b3)

    # Lane-dense slab -> (B, 1); garbage lanes of the ragged last tile are
    # sliced off here.
    return out.reshape(-1)[:B, None]


# ----------------------------- parameters ----------------------------------

def kaiming_uniform(key, out_features, in_features):
    # PyTorch nn.init.kaiming_uniform_(w, nonlinearity='relu') on an (out, in)
    # weight: bound = sqrt(6 / fan_in). Returned in (in, out) layout.
    bound = float(np.sqrt(6.0 / in_features))
    w = jax.random.uniform(key, (out_features, in_features),
                           minval=-bound, maxval=bound, dtype=jnp.float32)
    return w.T


def init_critic_params(key, state_dim, action_dim, hidden_dim):
    """Matches Critic.init_weights(): kaiming_uniform(relu) weights, zero biases."""
    k1, k2, k3 = jax.random.split(key, 3)
    in_dim = state_dim + action_dim
    w1 = kaiming_uniform(k1, hidden_dim, in_dim)      # (in_dim, H)
    b1 = jnp.zeros((1, hidden_dim), jnp.float32)
    w2 = kaiming_uniform(k2, hidden_dim, hidden_dim)  # (H, H)
    b2 = jnp.zeros((1, hidden_dim), jnp.float32)
    w3 = kaiming_uniform(k3, 1, hidden_dim)           # (H, 1)
    b3 = jnp.zeros((1, 1), jnp.float32)
    return (w1, b1, w2, b2, w3, b3)


def prepare_kernel_params(params, state_dim, mxu_dtype=jnp.bfloat16):
    """Kernel layout: split w1 into state/action parts, zero-pad the hidden dim
    to a multiple of 128 (padded units are ReLU(0)=0 and contribute 0 downstream,
    so the math is preserved), cast the MXU-side weights (w1_state, w2) to bf16."""
    w1, b1, w2, b2, w3, b3 = params
    H = w2.shape[0]
    ph = _round_up(H, 128) - H
    w1s = jnp.pad(w1[:state_dim, :], ((0, 0), (0, ph))).astype(mxu_dtype)   # (S, Hp)
    w1a = jnp.pad(w1[state_dim:, :], ((0, 0), (0, ph))).astype(jnp.float32) # (A, Hp) VPU
    b1p = jnp.pad(b1, ((0, 0), (0, ph))).astype(jnp.float32)                # (1, Hp)
    w2p = jnp.pad(w2, ((0, ph), (0, ph))).astype(mxu_dtype)                 # (Hp, Hp)
    b2p = jnp.pad(b2, ((0, 0), (0, ph))).astype(jnp.float32)                # (1, Hp)
    w3r = jnp.pad(w3.T, ((0, 0), (0, ph))).astype(jnp.float32)              # (1, Hp)
    b3s = b3.reshape(1, 1).astype(jnp.float32)                              # SMEM scalar
    return (w1s, w1a, b1p, w2p, b2p, w3r, b3s)


# ------------------------------ references ----------------------------------

def reference_f32(state, action, params):
    """Original module math, full f32."""
    w1, b1, w2, b2, w3, b3 = params
    x = jnp.concatenate([state, action], axis=-1)
    h1 = jnp.maximum(x @ w1 + b1, 0.0)
    h2 = jnp.maximum(h1 @ w2 + b2, 0.0)
    return h2 @ w3 + b3


def reference_matched(state, action, kparams):
    """Plain-JAX replica of the kernel math (bf16 MXU inputs, f32 accumulation)."""
    w1s, w1a, b1, w2, b2, w3r, b3 = kparams
    h1 = jnp.dot(state.astype(jnp.bfloat16), w1s, preferred_element_type=jnp.float32)
    h1 = jnp.maximum(h1 + action @ w1a + b1, 0.0)
    h2 = jnp.dot(h1.astype(jnp.bfloat16), w2, preferred_element_type=jnp.float32) + b2
    h2 = jnp.maximum(h2, 0.0)
    return jnp.sum(h2 * w3r, axis=-1, keepdims=True) + b3[0, 0]


# ------------------------------- demo / test --------------------------------

if __name__ == "__main__":
    # CartPole-like shapes: state_dim=4, action_dim=1, hidden=32.
    # batch=300 with tile_b=128 -> 3 grid steps including a ragged last tile.
    state_dim, action_dim, hidden_dim, batch = 4, 1, 32, 300

    key = jax.random.PRNGKey(0)
    kp, ks, ka = jax.random.split(key, 3)
    params = init_critic_params(kp, state_dim, action_dim, hidden_dim)
    kparams = prepare_kernel_params(params, state_dim)

    state = jax.random.normal(ks, (batch, state_dim), dtype=jnp.float32)
    action = jax.random.normal(ka, (batch, action_dim), dtype=jnp.float32)

    q = jax.block_until_ready(critic_forward(state, action, kparams, tile_b=128))
    assert q.shape == (batch, 1)

    # Tight check vs. a plain-JAX replica of the kernel math (bf16 MXU inputs).
    ref_m = reference_matched(state, action, kparams)
    np.testing.assert_allclose(np.asarray(q), np.asarray(ref_m), rtol=1e-3, atol=1e-3)

    # Loose sanity check vs. the original full-f32 module math.
    ref_f = reference_f32(state, action, params)
    np.testing.assert_allclose(np.asarray(q), np.asarray(ref_f), rtol=1e-1, atol=1e-1)

    # 1-D input path (torch unsqueeze equivalent); exercises a single ragged tile.
    q1 = jax.block_until_ready(critic_forward(state[0], action[0], kparams))
    np.testing.assert_allclose(np.asarray(q1), np.asarray(ref_m[:1]), rtol=1e-3, atol=1e-3)

    print("KERNEL_OK")
</pallas_src>

<mosaic_0001>
module attributes {stable_mosaic.version = 11 : i64} {
  func.func @critic_kernel(%arg0: i32, %arg1: memref<128x4xf32, #tpu.memory_space<vmem>>, %arg2: memref<128x1xf32, #tpu.memory_space<vmem>>, %arg3: memref<4x128xbf16, #tpu.memory_space<vmem>>, %arg4: memref<1x128xf32, #tpu.memory_space<vmem>>, %arg5: memref<1x128xf32, #tpu.memory_space<vmem>>, %arg6: memref<128x128xbf16, #tpu.memory_space<vmem>>, %arg7: memref<1x128xf32, #tpu.memory_space<vmem>>, %arg8: memref<1x128xf32, #tpu.memory_space<vmem>>, %arg9: memref<1x1xf32, #tpu.memory_space<smem>>, %arg10: memref<1x128xf32, #tpu.memory_space<vmem>>) attributes {dimension_semantics = [#tpu.dimension_semantics<parallel>], iteration_bounds = array<i64: 3>, scalar_prefetch = 0 : i64, scratch_operands = 0 : i64, tpu.core_type = #tpu.core_type<tc>, window_params = [{transform_indices = @transform_0, window_bounds = array<i64: 128, 4>}, {transform_indices = @transform_1, window_bounds = array<i64: 128, 1>}, {pipeline_mode = #tpu.pipeline_mode<synchronous>, transform_indices = @transform_2, window_bounds = array<i64: 4, 128>}, {pipeline_mode = #tpu.pipeline_mode<synchronous>, transform_indices = @transform_3, window_bounds = array<i64: 1, 128>}, {pipeline_mode = #tpu.pipeline_mode<synchronous>, transform_indices = @transform_4, window_bounds = array<i64: 1, 128>}, {pipeline_mode = #tpu.pipeline_mode<synchronous>, transform_indices = @transform_5, window_bounds = array<i64: 128, 128>}, {pipeline_mode = #tpu.pipeline_mode<synchronous>, transform_indices = @transform_6, window_bounds = array<i64: 1, 128>}, {pipeline_mode = #tpu.pipeline_mode<synchronous>, transform_indices = @transform_7, window_bounds = array<i64: 1, 128>}, {transform_indices = @transform_8, window_bounds = array<i64: 1, 1>}, {transform_indices = @transform_9, window_bounds = array<i64: 1, 128>}]} {
    %c0 = arith.constant 0 : index
    %c0_0 = arith.constant 0 : index
    %0 = vector.load %arg1[%c0, %c0_0] : memref<128x4xf32, #tpu.memory_space<vmem>>, vector<128x4xf32>
    %c0_1 = arith.constant 0 : index
    %c0_2 = arith.constant 0 : index
    %1 = vector.load %arg2[%c0_1, %c0_2] : memref<128x1xf32, #tpu.memory_space<vmem>>, vector<128x1xf32>
    %2 = arith.truncf %0 : vector<128x4xf32> to vector<128x4xbf16>
    %c0_3 = arith.constant 0 : index
    %c0_4 = arith.constant 0 : index
    %3 = vector.load %arg3[%c0_3, %c0_4] : memref<4x128xbf16, #tpu.memory_space<vmem>>, vector<4x128xbf16>
    %cst = arith.constant dense<0.000000e+00> : vector<128x128xf32>
    %4 = tpu.matmul %2, %3, %cst {dimension_numbers = #tpu.dot_dimension_numbers<[1], [0], [0], [1], [0, 0, 1, 1], [], []>} : vector<128x4xbf16>, vector<4x128xbf16>, vector<128x128xf32> -> vector<128x128xf32>
    %c0_5 = arith.constant 0 : index
    %c0_6 = arith.constant 0 : index
    %5 = vector.load %arg4[%c0_5, %c0_6] : memref<1x128xf32, #tpu.memory_space<vmem>>, vector<1x128xf32>
    %6 = vector.broadcast %1 : vector<128x1xf32> to vector<128x128xf32>
    %7 = vector.broadcast %5 : vector<1x128xf32> to vector<128x128xf32>
    %8 = arith.mulf %6, %7 : vector<128x128xf32>
    %9 = arith.addf %4, %8 : vector<128x128xf32>
    %c0_7 = arith.constant 0 : index
    %c0_8 = arith.constant 0 : index
    %10 = vector.load %arg5[%c0_7, %c0_8] : memref<1x128xf32, #tpu.memory_space<vmem>>, vector<1x128xf32>
    %11 = vector.broadcast %10 : vector<1x128xf32> to vector<128x128xf32>
    %12 = arith.addf %9, %11 : vector<128x128xf32>
    %cst_9 = arith.constant 0.000000e+00 : f32
    %13 = vector.broadcast %cst_9 : f32 to vector<128x128xf32>
    %14 = arith.maximumf %12, %13 : vector<128x128xf32>
    %15 = arith.truncf %14 : vector<128x128xf32> to vector<128x128xbf16>
    %c0_10 = arith.constant 0 : index
    %c0_11 = arith.constant 0 : index
    %16 = vector.load %arg6[%c0_10, %c0_11] : memref<128x128xbf16, #tpu.memory_space<vmem>>, vector<128x128xbf16>
    %cst_12 = arith.constant dense<0.000000e+00> : vector<128x128xf32>
    %17 = tpu.matmul %15, %16, %cst_12 {dimension_numbers = #tpu.dot_dimension_numbers<[1], [0], [0], [1], [0, 0, 1, 1], [], []>} : vector<128x128xbf16>, vector<128x128xbf16>, vector<128x128xf32> -> vector<128x128xf32>
    %c0_13 = arith.constant 0 : index
    %c0_14 = arith.constant 0 : index
    %18 = vector.load %arg7[%c0_13, %c0_14] : memref<1x128xf32, #tpu.memory_space<vmem>>, vector<1x128xf32>
    %19 = vector.broadcast %18 : vector<1x128xf32> to vector<128x128xf32>
    %20 = arith.addf %17, %19 : vector<128x128xf32>
    %cst_15 = arith.constant 0.000000e+00 : f32
    %21 = vector.broadcast %cst_15 : f32 to vector<128x128xf32>
    %22 = arith.maximumf %20, %21 : vector<128x128xf32>
    %c0_16 = arith.constant 0 : index
    %c0_17 = arith.constant 0 : index
    %23 = vector.load %arg8[%c0_16, %c0_17] : memref<1x128xf32, #tpu.memory_space<vmem>>, vector<1x128xf32>
    %24 = tpu.transpose %22, [1, 0] : vector<128x128xf32> -> vector<128x128xf32>
    %cst_18 = arith.constant dense<0.000000e+00> : vector<1x128xf32>
    %25 = tpu.matmul %23, %24, %cst_18 {dimension_numbers = #tpu.dot_dimension_numbers<[1], [0], [0], [1], [0, 0, 1, 1], [], []>} : vector<1x128xf32>, vector<128x128xf32>, vector<1x128xf32> -> vector<1x128xf32>
    %c0_19 = arith.constant 0 : index
    %c0_20 = arith.constant 0 : index
    %26 = memref.load %arg9[%c0_19, %c0_20] : memref<1x1xf32, #tpu.memory_space<smem>>
    %27 = vector.broadcast %26 : f32 to vector<1x128xf32>
    %28 = arith.addf %25, %27 : vector<1x128xf32>
    %c0_21 = arith.constant 0 : index
    %c0_22 = arith.constant 0 : index
    %29 = vector.load %arg10[%c0_21, %c0_22] : memref<1x128xf32, #tpu.memory_space<vmem>>, vector<1x128xf32>
    tpu.vector_store %arg10[%c0_21, %c0_22], %28 {strides = array<i32>} : memref<1x128xf32, #tpu.memory_space<vmem>>, vector<1x128xf32>,
    return
  }
  func.func @transform_0(%arg0: i32) -> (i32, i32) {
    %c0_i32 = arith.constant 0 : i32
    %c0_i32_0 = arith.constant 0 : i32
    return %arg0, %c0_i32 : i32, i32
  }
  func.func @transform_1(%arg0: i32) -> (i32, i32) {
    %c0_i32 = arith.constant 0 : i32
    %c0_i32_0 = arith.constant 0 : i32
    return %arg0, %c0_i32 : i32, i32
  }
  func.func @transform_2(%arg0: i32) -> (i32, i32) {
    %c0_i32 = arith.constant 0 : i32
    %c0_i32_0 = arith.constant 0 : i32
    %c0_i32_1 = arith.constant 0 : i32
    return %c0_i32, %c0_i32_0 : i32, i32
  }
  func.func @transform_3(%arg0: i32) -> (i32, i32) {
    %c0_i32 = arith.constant 0 : i32
    %c0_i32_0 = arith.constant 0 : i32
    %c0_i32_1 = arith.constant 0 : i32
    return %c0_i32, %c0_i32_0 : i32, i32
  }
  func.func @transform_4(%arg0: i32) -> (i32, i32) {
    %c0_i32 = arith.constant 0 : i32
    %c0_i32_0 = arith.constant 0 : i32
    %c0_i32_1 = arith.constant 0 : i32
    return %c0_i32, %c0_i32_0 : i32, i32
  }
  func.func @transform_5(%arg0: i32) -> (i32, i32) {
    %c0_i32 = arith.constant 0 : i32
    %c0_i32_0 = arith.constant 0 : i32
    %c0_i32_1 = arith.constant 0 : i32
    return %c0_i32, %c0_i32_0 : i32, i32
  }
  func.func @transform_6(%arg0: i32) -> (i32, i32) {
    %c0_i32 = arith.constant 0 : i32
    %c0_i32_0 = arith.constant 0 : i32
    %c0_i32_1 = arith.constant 0 : i32
    return %c0_i32, %c0_i32_0 : i32, i32
  }
  func.func @transform_7(%arg0: i32) -> (i32, i32) {
    %c0_i32 = arith.constant 0 : i32
    %c0_i32_0 = arith.constant 0 : i32
    %c0_i32_1 = arith.constant 0 : i32
    return %c0_i32, %c0_i32_0 : i32, i32
  }
  func.func @transform_8(%arg0: i32) -> (i32, i32) {
    %c0_i32 = arith.constant 0 : i32
    %c0_i32_0 = arith.constant 0 : i32
    %c0_i32_1 = arith.constant 0 : i32
    return %c0_i32, %c0_i32_0 : i32, i32
  }
  func.func @transform_9(%arg0: i32) -> (i32, i32) {
    %c0_i32 = arith.constant 0 : i32
    %c0_i32_0 = arith.constant 0 : i32
    return %c0_i32, %arg0 : i32, i32
  }
}

</mosaic_0001>

<bundles_post_ra>
// kernel: critic_forward.1
= control target key start
LH: loop header
LB: loop body
LE: loop exit
PB: predicated region body
PF: predicated region fallthrough
CT: control target
= control target key end

     0   :  { %s1027_s11 = smov 0   ;;  %s1195_s0 = inlined_call_operand.vmem [shape: f32[300,4], index: 0, kind: input, shape index: {}]   ;;  %s1196_s1 = inlined_call_operand.vmem [shape: f32[300,1], index: 1, kind: input, shape index: {}]   ;;  %s1197_s2 = inlined_call_operand.vmem [shape: bf16[4,128], index: 2, kind: input, shape index: {}]   ;;  %s1198_s3 = inlined_call_operand.vmem [shape: f32[1,128], index: 3, kind: input, shape index: {}]   ;;  %s1199_s4 = inlined_call_operand.vmem [shape: f32[1,128], index: 4, kind: input, shape index: {}]   ;;  %s1200_s5 = inlined_call_operand.vmem [shape: bf16[128,128], index: 5, kind: input, shape index: {}]   ;;  %s1201_s6 = inlined_call_operand.vmem [shape: f32[1,128], index: 6, kind: input, shape index: {}]   ;;  %s1202_s7 = inlined_call_operand.vmem [shape: f32[1,128], index: 7, kind: input, shape index: {}]   ;;  %s1203_s8 = inlined_call_operand.<no memory space> [shape: f32[1,1], index: 8, kind: input, shape index: {}]   ;;  %s1204_s9 = inlined_call_operand.vmem [shape: f32[1,384], index: 9, kind: output, shape index: {}]  }
   0x1   :  { %14 = sst [smem:[#allocation2]] %s1203_s8 }
   0x2 LB: > { %s1033_s12 = sadd.s32 4294967295, %s971_s11   ;;  %p878_p0 = scmp.ge.s32.totalorder %s971_s11, 1  ;;  %s971_s11 = sphi %s1027_s11, %s20_s11  }
   0x3   : > { %p316_p1 = scmp.lt.s32.totalorder %s971_s11, 4 }
   0x5   : > { %p317_p2 = pnand %p878_p0, %p316_p1 }
   0x6   : > { %s879_s8 = sshll.u32 (!%p317_p2), %s1033_s12, 4  ;;  %s792_s26 = sld [smem:[#allocation2]] (!%p317_p2) }
   0x7   : > { %320 = sbr.rel (%p317_p2) target bundleno = 557 (0x22d), region = 56  ;;  %p368_p3 = scmp.lt.s32.totalorder (!%p317_p2), %s879_s8, 37 }
   0x8   : > { %p391_p4 = scmp.lt.s32.totalorder (!%p317_p2), %s1033_s12, 2 }
   0xc   : > { %v435_v0 = vld [vmem:[%s1197_s2] sm:$0x3]  ;;  %vm561_vm0 = vcmask 1041408   ;;  %v973_v1 = vmov 0   ;;  %s1206_s8 = smov (!%p368_p3, %s879_s8), 37  ;;  %vm536_vm1 = vcmask 31744  }
   0xd   : > { %960 = vset.pattern.permute.xlu1 %v973_v1  ;;  %959 = vset.pattern.permute.xlu0 %v973_v1  ;;  %v563_v2 = vsel %vm561_vm0, %v435_v0, 0  ;;  %s880_s15 = sshll.u32 %s1206_s8, 3  ;;  %v932_v43 = vld [vmem:[%s1200_s5 + $0x38] sm:$0xff]  ;;  %v931_v44 = vld [vmem:[%s1200_s5 + $0x30] sm:$0xff]  ;;  %v930_v45 = vld [vmem:[%s1200_s5 + $0x28] sm:$0xff]  ;;  %s1208_s12 = smov (!%p391_p4, %s1033_s12), 2 }
   0xe   : > { %572 = vmatpush.bf16.msra.mxu0 %v563_v2  ;;  %933 = vmatpush.bf16.msra.mxu2 %v563_v2  ;;  %s1044_s18 = scalar_lea.vmem %s1196_s1, %s880_s15  ;;  %s1049_s21 = scalar_lea.vmem %s1195_s0, %s880_s15  ;;  %v929_v47 = vld [vmem:[%s1200_s5 + $0x20] sm:$0xff]  ;;  %v928_v48 = vld [vmem:[%s1200_s5 + $0x18] sm:$0xff]  ;;  %v927_v51 = vld [vmem:[%s1200_s5 + $0x10] sm:$0xff] }
   0xf   : > { %961 = vset.pattern.permute.xlu2 %v973_v1  ;;  %v421_v3 = vld [vmem:[%s1044_s18 + $0x50] sm:$0xff]  ;;  %v395_v5 = vld [vmem:[%s1049_s21] sm:$0xff]  ;;  %v396_v6 = vld [vmem:[%s1049_s21 + $0x8] sm:$0xff]  ;;  %934 = vmatpush.bf16.msra.mxu1 %v932_v43  ;;  %s393_s29 = scalar_lea.vmem %s1204_s9, %s1208_s12 }
  0x10   : > { %v413_v4 = vld [vmem:[%s1044_s18 + $0x10] sm:$0xff]  ;;  %489 = vperm.xlu0 %959, %v421_v3   ;;  %v403_v7 = vld [vmem:[%s1049_s21 + $0x40] sm:$0xff]  ;;  %v404_v8 = vld [vmem:[%s1049_s21 + $0x48] sm:$0xff]  ;;  %v427_v9 = vpack.c.bf16 %v396_v6, %v395_v5  ;;  %935 = vmatpush.bf16.msra.mxu3 %v932_v43 }
  0x11   : > { %449 = vperm.xlu1 %960, %v413_v4   ;;  %v431_v10 = vpack.c.bf16 %v404_v8, %v403_v7  ;;  %v423_v11 = vld [vmem:[%s1044_s18 + $0x60] sm:$0xff]  ;;  %v422_v12 = vld [vmem:[%s1044_s18 + $0x58] sm:$0xff]  ;;  %v424_v14 = vld [vmem:[%s1044_s18 + $0x68] sm:$0xff] }
  0x12   : > { %883 = vmatmul.msk.bf16.vlgmr.msra.gmra.mxu0 %vm536_vm1, %v427_v9  ;;  %499 = vperm.xlu2 %961, %v423_v11   ;;  %v414_v13 = vld [vmem:[%s1044_s18 + $0x18] sm:$0xff]  ;;  %v397_v15 = vld [vmem:[%s1049_s21 + $0x10] sm:$0xff]  ;;  %v415_v19 = vld [vmem:[%s1044_s18 + $0x20] sm:$0xff] }
  0x13   : > { %887 = vmatmul.msk.bf16.vlgmr.msra.gmra.mxu2 %vm536_vm1, %v431_v10  ;;  %v398_v16 = vld [vmem:[%s1049_s21 + $0x18] sm:$0xff]  ;;  %v405_v17 = vld [vmem:[%s1049_s21 + $0x50] sm:$0xff]  ;;  %v416_v20 = vld [vmem:[%s1044_s18 + $0x28] sm:$0xff]  ;;  %726 = vmatpush.bf16.msrb.mxu0 %v932_v43 }
  0x14   : > { %v406_v18 = vld [vmem:[%s1049_s21 + $0x58] sm:$0xff]  ;;  %v428_v21 = vpack.c.bf16 %v398_v16, %v397_v15  ;;  %v425_v23 = vld [vmem:[%s1044_s18 + $0x70] sm:$0xff]  ;;  %v399_v27 = vld [vmem:[%s1049_s21 + $0x20] sm:$0xff]  ;;  %936 = vmatpush.bf16.msra.mxu1 %v931_v44  ;;  %937 = vmatpush.bf16.msra.mxu3 %v931_v44 }
  0x15   : > { %v432_v22 = vpack.c.bf16 %v406_v18, %v405_v17  ;;  %v426_v24 = vld [vmem:[%s1044_s18 + $0x78] sm:$0xff]  ;;  %v417_v25 = vld [vmem:[%s1044_s18 + $0x30] sm:$0xff]  ;;  %v400_v28 = vld [vmem:[%s1049_s21 + $0x28] sm:$0xff] }
  0x16   : > { %v418_v26 = vld [vmem:[%s1044_s18 + $0x38] sm:$0xff]  ;;  %v407_v29 = vld [vmem:[%s1049_s21 + $0x60] sm:$0xff]  ;;  %v408_v30 = vld [vmem:[%s1049_s21 + $0x68] sm:$0xff]  ;;  %v429_v33 = vpack.c.bf16 %v400_v28, %v399_v27 }
  0x17   : > { %v419_v31 = vld [vmem:[%s1044_s18 + $0x40] sm:$0xff]  ;;  %v420_v32 = vld [vmem:[%s1044_s18 + $0x48] sm:$0xff]  ;;  %v433_v34 = vpack.c.bf16 %v408_v30, %v407_v29  ;;  %v401_v37 = vld [vmem:[%s1049_s21 + $0x30] sm:$0xff]  ;;  %727 = vmatpush.bf16.msrb.mxu0 %v931_v44 }
  0x18   : > { %494 = vperm.xlu0 %959, %v422_v12   ;;  %v411_v35 = vld [vmem:[%s1044_s18] sm:$0xff]  ;;  %v412_v36 = vld [vmem:[%s1044_s18 + $0x8] sm:$0xff]  ;;  %v402_v38 = vld [vmem:[%s1049_s21 + $0x38] sm:$0xff]  ;;  %938 = vmatpush.bf16.msra.mxu1 %v930_v45 }
  0x19   : > { %454 = vperm.xlu1 %960, %v414_v13   ;;  %v409_v39 = vld [vmem:[%s1049_s21 + $0x70] sm:$0xff]  ;;  %v410_v40 = vld [vmem:[%s1049_s21 + $0x78] sm:$0xff]  ;;  %v430_v41 = vpack.c.bf16 %v402_v38, %v401_v37  ;;  %939 = vmatpush.bf16.msra.mxu3 %v930_v45  ;;  %v926_v52 = vld [vmem:[%s1200_s5 + $0x8] sm:$0xff] }
  0x1a   : > { %504 = vperm.xlu2 %961, %v424_v14   ;;  %v434_v42 = vpack.c.bf16 %v410_v40, %v409_v39  ;;  %v925_v54 = vld [vmem:[%s1200_s5] sm:$0xff] }
  0x1b   : > { %728 = vmatpush.bf16.msrb.mxu0 %v930_v45  ;;  %v1130_v63 = vld [vmem:[%s1198_s3] ss:$0 sm:$0xff] }
  0x1c   : > { %940 = vmatpush.bf16.msra.mxu1 %v929_v47  ;;  %v1141_v8 = vld [vmem:[%s1199_s4] ss:$0 sm:$0xff] }
  0x1d   : > { %941 = vmatpush.bf16.msra.mxu3 %v929_v47 }
  0x1f   : > { %729 = vmatpush.bf16.msrb.mxu0 %v929_v47 }
  0x20   : > { %459 = vperm.xlu0 %959, %v415_v19   ;;  %942 = vmatpush.bf16.msra.mxu1 %v928_v48 }
  0x21   : > { %464 = vperm.xlu1 %960, %v416_v20   ;;  %943 = vmatpush.bf16.msra.mxu3 %v928_v48 }
  0x22   : > { %884 = vmatmul.msk.bf16.gmra.mxu0 %vm536_vm1, %v428_v21  ;;  %509 = vperm.xlu2 %961, %v425_v23  }
  0x23   : > { %888 = vmatmul.msk.bf16.gmra.mxu2 %vm536_vm1, %v432_v22  ;;  %730 = vmatpush.bf16.msrb.mxu0 %v928_v48 }
  0x24   : > { %944 = vmatpush.bf16.msra.mxu1 %v927_v51 }
  0x25   : > { %945 = vmatpush.bf16.msra.mxu3 %v927_v51 }
  0x27   : > { %731 = vmatpush.bf16.msrb.mxu0 %v927_v51 }
  0x28   : > { %514 = vperm.xlu0 %959, %v426_v24   ;;  %946 = vmatpush.bf16.msra.mxu1 %v926_v52 }
  0x29   : > { %469 = vperm.xlu1 %960, %v417_v25   ;;  %947 = vmatpush.bf16.msra.mxu3 %v926_v52 }
  0x2a   : > { %474 = vperm.xlu2 %961, %v418_v26  }
  0x2b   : > { %732 = vmatpush.bf16.msrb.mxu0 %v926_v52 }
  0x2c   : > { %948 = vmatpush.bf16.msra.mxu1 %v925_v54 }
  0x2d   : > { %949 = vmatpush.bf16.msra.mxu3 %v925_v54 }
  0x2f   : > { %733 = vmatpush.bf16.msrb.mxu0 %v925_v54 }
  0x30   : > { %479 = vperm.xlu0 %959, %v419_v31  }
  0x31   : > { %484 = vperm.xlu1 %960, %v420_v32  }
  0x32   : > { %885 = vmatmul.msk.bf16.gmra.mxu0 %vm536_vm1, %v429_v33  ;;  %439 = vperm.xlu2 %961, %v411_v35  }
  0x33   : > { %889 = vmatmul.msk.bf16.gmra.mxu2 %vm536_vm1, %v433_v34 }
  0x38   : > { %444 = vperm.xlu0 %959, %v412_v36  }
  0x42   : > { %886 = vmatmul.msk.bf16.gmra.mxu0 %vm536_vm1, %v430_v41 }
  0x43   : > { %890 = vmatmul.msk.bf16.gmra.mxu2 %vm536_vm1, %v434_v42 }
  0x6c   : > { %v1100_v46 = vpop.permute.xlu2 %499 }
  0x6d   : > { %v532_v42 = vmul.f32 %v1130_v63, %v1100_v46 }
  0x74   : > { %v1108_v50 = vpop.permute.xlu2 %504 }
  0x75   : > { %v533_v51 = vmul.f32 %v1130_v63, %v1108_v50 }
  0x7c   : > { %v1119_v55 = vpop.permute.xlu2 %509 }
  0x82   : > { %v490_v49 = vpop.permute.xlu0 %489 }
  0x83   : > { %v450_v61 = vpop.permute.xlu1 %449  ;;  %v530_v11 = vmul.f32 %v1130_v63, %v490_v49 }
  0x84   : > { %v1123_v60 = vpop.permute.xlu2 %474  ;;  %v522_v1 = vmul.f32 %v1130_v63, %v450_v61 }
  0x85   : > { %v527_v50 = vmul.f32 %v1130_v63, %v1123_v60 }
  0x8a   : > { %v495_v53 = vpop.permute.xlu0 %494 }
  0x8b   : > { %v455_v6 = vpop.permute.xlu1 %454  ;;  %v531_v21 = vmul.f32 %v1130_v63, %v495_v53 }
  0x8c   : > { %v440_v3 = vpop.permute.xlu2 %439  ;;  %v523_v7 = vmul.f32 %v1130_v63, %v455_v6 }
  0x8d   : > { %v520_v9 = vmul.f32 %v1130_v63, %v440_v3 }
  0x8f   : > { %v574_v56 = vpop.f32.mrf.mxu0 }
  0x90   : > { %v575_v14 = vadd.f32 %v574_v56, %v520_v9 }
  0x92   : > { %v460_v57 = vpop.permute.xlu0 %459  ;;  %v618_v22 = vadd.f32 %v1141_v8, %v575_v14 }
  0x93   : > { %v524_v34 = vmul.f32 %v1130_v63, %v460_v57  ;;  %v465_v40 = vpop.permute.xlu1 %464 }
  0x94   : > { %v634_v31 = vmax.f32 %v618_v22, 0.0  ;;  %v525_v43 = vmul.f32 %v1130_v63, %v465_v40  ;;  %v964_v40 = vld [vmem:[%s1201_s6] ss:$0 sm:$0xff] }
  0x96   : > { %v1121_v58 = vpop.f32.mrf.mxu2 }
  0x97   : > { %v576_v59 = vpop.f32.mrf.mxu0 }
  0x9a   : > { %v1125_v62 = vpop.permute.xlu0 %514 }
  0x9e   : > { %v1132_v0 = vpop.f32.mrf.mxu2 }
  0x9f   : > { %v579_v2 = vpop.f32.mrf.mxu0 }
  0xa0   : > { %v580_v5 = vadd.f32 %v579_v2, %v522_v1  ;;  %v470_v1 = vpop.permute.xlu1 %469 }
  0xa1   : > { %v526_v2 = vmul.f32 %v1130_v63, %v470_v1 }
  0xa2   : > { %v1135_v4 = vpop.permute.xlu0 %479  ;;  %v620_v12 = vadd.f32 %v1141_v8, %v580_v5 }
  0xa3   : > { %v528_v60 = vmul.f32 %v1130_v63, %v1135_v4 }
  0xa4   : > { %v636_v17 = vmax.f32 %v620_v12, 0.0 }
  0xa6   : > { %v599_v10 = vpop.f32.mrf.mxu2 }
  0xa7   : > { %v581_v13 = vpop.f32.mrf.mxu0  ;;  %v600_v18 = vadd.f32 %v599_v10, %v530_v11  ;;  %v534_v11 = vmul.f32 %v1130_v63, %v1119_v55 }
  0xa8   : > { %v582_v15 = vadd.f32 %v581_v13, %v523_v7 }
  0xa9   : > { %v628_v26 = vadd.f32 %v1141_v8, %v600_v18 }
  0xaa   : > { %v445_v16 = vpop.permute.xlu0 %444  ;;  %v621_v19 = vadd.f32 %v1141_v8, %v582_v15 }
  0xab   : > { %v521_v20 = vmul.f32 %v1130_v63, %v445_v16  ;;  %v644_v35 = vmax.f32 %v628_v26, 0.0  ;;  %v485_v16 = vpop.permute.xlu1 %484 }
  0xac   : > { %v637_v23 = vmax.f32 %v621_v19, 0.0 }
  0xad   : > { %v577_v24 = vadd.f32 %v576_v59, %v521_v20 }
  0xae   : > { %v601_v25 = vpop.f32.mrf.mxu2  ;;  %v651_v29 = vpack.c.bf16 %v637_v23, %v636_v17  ;;  %v535_v17 = vmul.f32 %v1130_v63, %v1125_v62 }
  0xaf   : > { %v619_v27 = vadd.f32 %v1141_v8, %v577_v24  ;;  %v602_v28 = vadd.f32 %v601_v25, %v531_v21  ;;  %v584_v30 = vpop.f32.mrf.mxu0  ;;  %v529_v21 = vmul.f32 %v1130_v63, %v485_v16  ;;  %v595_v25 = vadd.f32 %v1121_v58, %v528_v60 }
  0xb0   : > { %739 = vmatmul.bf16.vlgmr.msra.gmra.mxu1 %v651_v29  ;;  %v585_v38 = vadd.f32 %v584_v30, %v524_v34 }
  0xb1   : > { %v635_v32 = vmax.f32 %v619_v27, 0.0  ;;  %v629_v33 = vadd.f32 %v1141_v8, %v602_v28  ;;  %v597_v26 = vadd.f32 %v1132_v0, %v529_v21  ;;  %v626_v4 = vadd.f32 %v1141_v8, %v595_v25  ;;  %v791_v21 = vld [vmem:[%s1202_s7] sm:$0x1] }
  0xb2   : > { %v622_v45 = vadd.f32 %v1141_v8, %v585_v38 }
  0xb3   : > { %v645_v36 = vmax.f32 %v629_v33, 0.0  ;;  %v650_v37 = vpack.c.bf16 %v635_v32, %v634_v31  ;;  %v627_v29 = vadd.f32 %v1141_v8, %v597_v26  ;;  %v642_v63 = vmax.f32 %v626_v4, 0.0 }
  0xb4   : > { %v638_v52 = vmax.f32 %v622_v45, 0.0 }
  0xb5   : > { %734 = vmatmul.bf16.vlgmr.msrb.gmra.mxu0 %v650_v37  ;;  %v655_v39 = vpack.c.bf16 %v645_v36, %v644_v35  ;;  %v643_v30 = vmax.f32 %v627_v29, 0.0 }
  0xb6   : > { %v604_v41 = vpop.f32.mrf.mxu2 }
  0xb7   : > { %759 = vmatmul.bf16.vlgmr.msra.gmra.mxu3 %v655_v39  ;;  %v586_v44 = vpop.f32.mrf.mxu0  ;;  %v605_v48 = vadd.f32 %v604_v41, %v532_v42  ;;  %v654_v31 = vpack.c.bf16 %v643_v30, %v642_v63 }
  0xb8   : > { %v587_v47 = vadd.f32 %v586_v44, %v525_v43 }
  0xb9   : > { %v630_v56 = vadd.f32 %v1141_v8, %v605_v48 }
  0xba   : > { %v623_v49 = vadd.f32 %v1141_v8, %v587_v47 }
  0xbb   : > { %v646_v3 = vmax.f32 %v630_v56, 0.0 }
  0xbc   : > { %v639_v53 = vmax.f32 %v623_v49, 0.0 }
  0xbe   : > { %v606_v54 = vpop.f32.mrf.mxu2  ;;  %v652_v46 = vpack.c.bf16 %v639_v53, %v638_v52 }
  0xbf   : > { %v607_v57 = vadd.f32 %v606_v54, %v533_v51  ;;  %v589_v59 = vpop.f32.mrf.mxu0 }
  0xc0   : > { %744 = vmatmul.bf16.gmra.mxu1 %v652_v46  ;;  %v590_v6 = vadd.f32 %v589_v59, %v526_v2 }
  0xc1   : > { %v631_v61 = vadd.f32 %v1141_v8, %v607_v57 }
  0xc2   : > { %v624_v12 = vadd.f32 %v1141_v8, %v590_v6 }
  0xc3   : > { %v647_v5 = vmax.f32 %v631_v61, 0.0 }
  0xc4   : > { %v640_v18 = vmax.f32 %v624_v12, 0.0 }
  0xc5   : > { %v656_v7 = vpack.c.bf16 %v647_v5, %v646_v3 }
  0xc6   : > { %v609_v9 = vpop.f32.mrf.mxu2 }
  0xc7   : > { %764 = vmatmul.bf16.gmra.mxu3 %v656_v7  ;;  %v591_v10 = vpop.f32.mrf.mxu0  ;;  %v610_v14 = vadd.f32 %v609_v9, %v534_v11 }
  0xc8   : > { %v592_v13 = vadd.f32 %v591_v10, %v527_v50 }
  0xc9   : > { %v632_v55 = vadd.f32 %v1141_v8, %v610_v14 }
  0xca   : > { %v625_v15 = vadd.f32 %v1141_v8, %v592_v13 }
  0xcb   : > { %v648_v62 = vmax.f32 %v632_v55, 0.0  ;;  %v793_v55 = vstv %s792_s26 }
  0xcc   : > { %v641_v19 = vmax.f32 %v625_v15, 0.0 }
  0xce   : > { %v611_v20 = vpop.f32.mrf.mxu2  ;;  %v653_v23 = vpack.c.bf16 %v641_v19, %v640_v18 }
  0xcf   : > { %v612_v22 = vadd.f32 %v611_v20, %v535_v17 }
  0xd0   : > { %749 = vmatmul.bf16.gmra.mxu1 %v653_v23 }
  0xd1   : > { %v633_v24 = vadd.f32 %v1141_v8, %v612_v22 }
  0xd3   : > { %v649_v27 = vmax.f32 %v633_v24, 0.0 }
  0xd5   : > { %v657_v28 = vpack.c.bf16 %v649_v27, %v648_v62 }
  0xd7   : > { %769 = vmatmul.bf16.gmra.mxu3 %v657_v28 }
  0xe0   : > { %754 = vmatmul.bf16.gmra.mxu1 %v654_v31 }
 0x12d   : > { %v740_v32 = vpop.f32.mrf.mxu1 }
 0x12e   : > { %v741_v14 = vadd.f32 %v964_v40, %v740_v32 }
 0x130   : > { %v777_v17 = vmax.f32 %v741_v14, 0.0 }
 0x132   : > { %v735_v50 = vpop.f32.mrf.mxu0 }
 0x133   : > { %v736_v19 = vadd.f32 %v964_v40, %v735_v50 }
 0x135   : > { %v742_v33 = vpop.f32.mrf.mxu1  ;;  %v775_v20 = vmax.f32 %v736_v19, 0.0 }
 0x136   : > { %v743_v12 = vadd.f32 %v964_v40, %v742_v33 }
 0x138   : > { %v778_v15 = vmax.f32 %v743_v12, 0.0 }
 0x13a   : > { %v760_v34 = vpop.f32.mrf.mxu3  ;;  %v737_v16 = vpop.f32.mrf.mxu0 }
 0x13b   : > { %v761_v54 = vadd.f32 %v964_v40, %v760_v34  ;;  %v738_v18 = vadd.f32 %v964_v40, %v737_v16 }
 0x13d   : > { %v745_v36 = vpop.f32.mrf.mxu1  ;;  %v785_v46 = vmax.f32 %v761_v54, 0.0  ;;  %v776_v60 = vmax.f32 %v738_v18, 0.0 }
 0x13e   : > { %v746_v10 = vadd.f32 %v964_v40, %v745_v36 }
 0x140   : > { %v779_v13 = vmax.f32 %v746_v10, 0.0 }
 0x142   : > { %v762_v35 = vpop.f32.mrf.mxu3 }
 0x143   : > { %v763_v52 = vadd.f32 %v964_v40, %v762_v35 }
 0x145   : > { %v747_v37 = vpop.f32.mrf.mxu1  ;;  %v786_v56 = vmax.f32 %v763_v52, 0.0 }
 0x146   : > { %v748_v7 = vadd.f32 %v964_v40, %v747_v37 }
 0x148   : > { %v780_v11 = vmax.f32 %v748_v7, 0.0 }
 0x14a   : > { %v765_v58 = vpop.f32.mrf.mxu3 }
 0x14b   : > { %v766_v49 = vadd.f32 %v964_v40, %v765_v58 }
 0x14d   : > { %v750_v38 = vpop.f32.mrf.mxu1  ;;  %v787_v53 = vmax.f32 %v766_v49, 0.0 }
 0x14e   : > { %v751_v5 = vadd.f32 %v964_v40, %v750_v38 }
 0x150   : > { %v781_v9 = vmax.f32 %v751_v5, 0.0 }
 0x152   : > { %v767_v0 = vpop.f32.mrf.mxu3 }
 0x153   : > { %v768_v45 = vadd.f32 %v964_v40, %v767_v0 }
 0x155   : > { %v752_v41 = vpop.f32.mrf.mxu1  ;;  %v788_v51 = vmax.f32 %v768_v45, 0.0 }
 0x156   : > { %v753_v2 = vadd.f32 %v964_v40, %v752_v41 }
 0x158   : > { %v782_v6 = vmax.f32 %v753_v2, 0.0 }
 0x15a   : > { %v770_v39 = vpop.f32.mrf.mxu3 }
 0x15b   : > { %v771_v43 = vadd.f32 %v964_v40, %v770_v39 }
 0x15d   : > { %v789_v47 = vmax.f32 %v771_v43, 0.0  ;;  %v755_v48 = vpop.f32.mrf.mxu1 }
 0x15e   : > { %v756_v61 = vadd.f32 %v964_v40, %v755_v48 }
 0x160   : > { %v783_v3 = vmax.f32 %v756_v61, 0.0 }
 0x162   : > { %v772_v8 = vpop.f32.mrf.mxu3 }
 0x163   : > { %v773_v42 = vadd.f32 %v964_v40, %v772_v8 }
 0x165   : > { %v790_v44 = vmax.f32 %v773_v42, 0.0  ;;  %v757_v57 = vpop.f32.mrf.mxu1 }
 0x166   : > { %v758_v59 = vadd.f32 %v964_v40, %v757_v57 }
 0x167   : > { %794 = vmatpush.xpose.msrb.mxu2 %v790_v44 }
 0x168   : > { %v784_v1 = vmax.f32 %v758_v59, 0.0 }
 0x16b   : > { %795 = vmatpush.xpose.msrb.mxu2 %v789_v47 }
 0x16f   : > { %796 = vmatpush.xpose.msrb.mxu2 %v788_v51 }
 0x173   : > { %797 = vmatpush.xpose.msrb.mxu2 %v787_v53 }
 0x177   : > { %798 = vmatpush.xpose.msrb.mxu2 %v786_v56 }
 0x17b   : > { %799 = vmatpush.xpose.msrb.mxu2 %v785_v46 }
 0x17f   : > { %800 = vmatpush.xpose.msrb.mxu2 %v784_v1 }
 0x183   : > { %801 = vmatpush.xpose.msrb.mxu2 %v783_v3 }
 0x187   : > { %802 = vmatpush.xpose.msrb.mxu2 %v782_v6 }
 0x18b   : > { %803 = vmatpush.xpose.msrb.mxu2 %v781_v9 }
 0x18f   : > { %804 = vmatpush.xpose.msrb.mxu2 %v780_v11 }
 0x193   : > { %805 = vmatpush.xpose.msrb.mxu2 %v779_v13 }
 0x197   : > { %806 = vmatpush.xpose.msrb.mxu2 %v778_v15 }
 0x19b   : > { %807 = vmatpush.xpose.msrb.mxu2 %v777_v17 }
 0x19f   : > { %808 = vmatpush.xpose.msrb.mxu2 %v776_v60 }
 0x1a3   : > { %809 = vmatpush.xpose.msrb.mxu2 %v775_v20 }
 0x1a6   : > { %810 = vmatmul.f32.vlgmr.msrb.gmra.mxu2 %v791_v21 }
 0x229   : > { %v811_v22 = vpop.f32.mrf.mxu2 }
 0x22a   : > { %v812_v23 = vadd.f32 %v811_v22, %v793_v55 }
 0x22c   : > { %814 = vst [vmem:[%s393_s29] sm:$0x1] %v812_v23 }
 0x22d PF: > { %s20_s11 = sadd.s32 1, %s971_s11  }
 0x22e   : > { %p17_p5 = scmp.ge.s32.totalorder %s20_s11, 5  }
 0x230   :  { %19 = sbr.rel (!%p17_p5) target bundleno = 2 (0x2), region = 89 }

</bundles_post_ra>
